<compile_context>
chip_gen: v7x
topology: tpu7x:2x2x1
jax: 0.10.0
libtpu: 0.0.40
codegen_flags: <defaults>
</compile_context>

<pallas_src>
import functools

import jax
import jax.numpy as jnp
from jax import lax
from jax.experimental import pallas as pl
from jax.experimental.pallas import tpu as pltpu

F32 = jnp.float32
BF16 = jnp.bfloat16


def _round_up(x, m):
    return (x + m - 1) // m * m


# ---------------------------------------------------------------------------
# Generic row-tiled dense layer
# ---------------------------------------------------------------------------
def _linear_kernel(x_ref, w_ref, b_ref, o_ref):
    o_ref[...] = (jnp.dot(x_ref[...], w_ref[...], preferred_element_type=F32)
                  + b_ref[...])


def pallas_linear(x, w, b=None):
    """y = x @ w + b over the last axis.

    Leading dims are flattened to rows and row-tiled; operands are bf16 with
    f32 accumulation; the output minor dim is padded to a multiple of 128 so
    stores are lane-dense, then sliced back.
    """
    *lead, Din = x.shape
    Dout = w.shape[1]
    M = 1
    for d in lead:
        M *= d
    x2 = x.reshape(M, Din)

    if M <= 256:
        Mp = _round_up(M, 16)
        TM = Mp
    else:
        Mp = _round_up(M, 256)
        TM = 256
    DoutP = _round_up(Dout, 128)

    x_p = jnp.pad(x2, ((0, Mp - M), (0, 0))).astype(BF16)
    w_p = jnp.pad(w, ((0, 0), (0, DoutP - Dout))).astype(BF16)
    if b is None:
        b_p = jnp.zeros((1, DoutP), F32)
    else:
        b_p = jnp.pad(b, (0, DoutP - Dout)).reshape(1, DoutP).astype(F32)

    out = pl.pallas_call(
        _linear_kernel,
        out_shape=jax.ShapeDtypeStruct((Mp, DoutP), F32),
        grid=(Mp // TM,),
        in_specs=[
            pl.BlockSpec((TM, Din), lambda i: (i, 0)),
            pl.BlockSpec((Din, DoutP), lambda i: (0, 0)),
            pl.BlockSpec((1, DoutP), lambda i: (0, 0)),
        ],
        out_specs=pl.BlockSpec((TM, DoutP), lambda i: (i, 0)),
        compiler_params=pltpu.CompilerParams(dimension_semantics=("parallel",)),
    )(x_p, w_p, b_p)
    return out[:M, :Dout].reshape(*lead, Dout)


# ---------------------------------------------------------------------------
# Fused visual encoder stand-in: patch embedding + visual projection
# ---------------------------------------------------------------------------
def _visual_encoder_kernel(x_ref, w1_ref, b1_ref, w2_ref, b2_ref, o_ref):
    h = jnp.dot(x_ref[...], w1_ref[...], preferred_element_type=F32) + b1_ref[...]
    o_ref[...] = (jnp.dot(h.astype(BF16), w2_ref[...],
                          preferred_element_type=F32) + b2_ref[...])


def pallas_visual_encoder(patches, w1, b1, w2, b2):
    B, P, Din = patches.shape
    Dmid = w1.shape[1]
    D = w2.shape[1]
    M = B * P
    if M <= 256:
        Mp = _round_up(M, 16)
        TM = Mp
    else:
        Mp = _round_up(M, 256)
        TM = 256
    x_p = jnp.pad(patches.reshape(M, Din), ((0, Mp - M), (0, 0))).astype(BF16)
    out = pl.pallas_call(
        _visual_encoder_kernel,
        out_shape=jax.ShapeDtypeStruct((Mp, D), F32),
        grid=(Mp // TM,),
        in_specs=[
            pl.BlockSpec((TM, Din), lambda i: (i, 0)),
            pl.BlockSpec((Din, Dmid), lambda i: (0, 0)),
            pl.BlockSpec((1, Dmid), lambda i: (0, 0)),
            pl.BlockSpec((Dmid, D), lambda i: (0, 0)),
            pl.BlockSpec((1, D), lambda i: (0, 0)),
        ],
        out_specs=pl.BlockSpec((TM, D), lambda i: (i, 0)),
        compiler_params=pltpu.CompilerParams(dimension_semantics=("parallel",)),
    )(x_p, w1.astype(BF16), b1.reshape(1, Dmid).astype(F32),
      w2.astype(BF16), b2.reshape(1, D).astype(F32))
    return out[:M].reshape(B, P, D)


# ---------------------------------------------------------------------------
# Fused layout encoder stand-in + prepare_layout_prompt
# ---------------------------------------------------------------------------
def _layout_prompt_kernel(bbox_ref, vis_ref, wb_ref, bb_ref, pos_ref,
                          g_ref, bta_ref, o_ref):
    x = bbox_ref[0].astype(BF16)                                  # (N, Dbox)
    e = jnp.dot(x, wb_ref[...], preferred_element_type=F32) + bb_ref[...]
    e = e + vis_ref[0]            # pooled visual context (1, D)
    e = e + pos_ref[...]          # positional embedding  (N, D)
    mu = jnp.mean(e, axis=-1, keepdims=True)
    var = jnp.mean((e - mu) ** 2, axis=-1, keepdims=True)
    o_ref[0] = (e - mu) * lax.rsqrt(var + 1e-5) * g_ref[...] + bta_ref[...]


def pallas_layout_prompt(bbox_pad, vis_mean, wb, bb, pos, gamma, beta):
    B, N, Dbox = bbox_pad.shape
    D = wb.shape[1]
    return pl.pallas_call(
        _layout_prompt_kernel,
        out_shape=jax.ShapeDtypeStruct((B, N, D), F32),
        grid=(B,),
        in_specs=[
            pl.BlockSpec((1, N, Dbox), lambda i: (i, 0, 0)),
            pl.BlockSpec((1, 1, D), lambda i: (i, 0, 0)),
            pl.BlockSpec((Dbox, D), lambda i: (0, 0)),
            pl.BlockSpec((1, D), lambda i: (0, 0)),
            pl.BlockSpec((N, D), lambda i: (0, 0)),
            pl.BlockSpec((1, D), lambda i: (0, 0)),
            pl.BlockSpec((1, D), lambda i: (0, 0)),
        ],
        out_specs=pl.BlockSpec((1, N, D), lambda i: (i, 0, 0)),
        compiler_params=pltpu.CompilerParams(dimension_semantics=("parallel",)),
    )(bbox_pad, vis_mean, wb.astype(BF16), bb.reshape(1, D), pos,
      gamma.reshape(1, D), beta.reshape(1, D))


# ---------------------------------------------------------------------------
# BART-style decoder layer stand-in (masked self-attn + cross-attn + FFN)
# ---------------------------------------------------------------------------
def _decoder_kernel(h_ref, vis_ref, pad_ref, wqkv_s_ref, wo_s_ref,
                    wqkv_c_ref, wo_c_ref, w1_ref, w2_ref,
                    lng_ref, lnb_ref, o_ref, *, lp, scale):
    D = h_ref.shape[-1]
    T = h_ref.shape[1]
    h = h_ref[0]                                                  # (T, D) f32
    vis = vis_ref[0].astype(BF16)                                 # (P, D)
    pad = pad_ref[...]                                            # (1, T)
    lng = lng_ref[...]
    lnb = lnb_ref[...]

    def layernorm(x, idx):
        mu = jnp.mean(x, axis=-1, keepdims=True)
        var = jnp.mean((x - mu) ** 2, axis=-1, keepdims=True)
        return ((x - mu) * lax.rsqrt(var + 1e-5)
                * lng[idx:idx + 1] + lnb[idx:idx + 1])

    def softmax(s):
        m = jnp.max(s, axis=-1, keepdims=True)
        e = jnp.exp(s - m)
        return e * pl.reciprocal(jnp.sum(e, axis=-1, keepdims=True), approx=True)

    # Additive causal+padding mask rebuilt in-kernel (no (B,T,T) DMA).
    # Reproduces the reference `causal_mask * padding_mask` exactly, including
    # its quirks: the prompt block is fully visible, the OTSL block masks the
    # diagonal, and padded key columns multiply to 0 (i.e. stay attendable).
    r = lax.broadcasted_iota(jnp.int32, (T, T), 0)
    c = lax.broadcasted_iota(jnp.int32, (T, T), 1)
    causal = jnp.where(c < lp, 0.0,
             jnp.where(r < lp, -10000.0,
             jnp.where(c >= r, -10000.0, 0.0)))
    mask = causal * pad                                           # keyed on column

    # --- masked self-attention (single-head stand-in) ---
    # TODO(synk): multi-head attention / per-projection biases of BartModel
    #             are not reimplemented in this stand-in layer.
    qkv = jnp.dot(h.astype(BF16), wqkv_s_ref[...], preferred_element_type=F32)
    q, k, v = qkv[:, :D], qkv[:, D:2 * D], qkv[:, 2 * D:]
    s = lax.dot_general(q.astype(BF16), k.astype(BF16),
                        (((1,), (1,)), ((), ())),
                        preferred_element_type=F32) * scale + mask
    p = softmax(s)
    attn = jnp.dot(p.astype(BF16), v.astype(BF16), preferred_element_type=F32)
    h = layernorm(h + jnp.dot(attn.astype(BF16), wo_s_ref[...],
                              preferred_element_type=F32), 0)

    # --- cross-attention over visual features (encoder mask is all ones) ---
    wc = wqkv_c_ref[...]
    qc = jnp.dot(h.astype(BF16), wc[:, :D], preferred_element_type=F32)
    kc = jnp.dot(vis, wc[:, D:2 * D], preferred_element_type=F32)
    vc = jnp.dot(vis, wc[:, 2 * D:], preferred_element_type=F32)
    sc = lax.dot_general(qc.astype(BF16), kc.astype(BF16),
                         (((1,), (1,)), ((), ())),
                         preferred_element_type=F32) * scale
    pc = softmax(sc)
    cattn = jnp.dot(pc.astype(BF16), vc.astype(BF16), preferred_element_type=F32)
    h = layernorm(h + jnp.dot(cattn.astype(BF16), wo_c_ref[...],
                              preferred_element_type=F32), 1)

    # --- feed-forward ---
    ff1 = jax.nn.gelu(jnp.dot(h.astype(BF16), w1_ref[...],
                              preferred_element_type=F32))
    ff = jnp.dot(ff1.astype(BF16), w2_ref[...], preferred_element_type=F32)
    o_ref[0] = layernorm(h + ff, 2)


def pallas_decoder_layer(h, vis, pad_mask, wqkv_s, wo_s, wqkv_c, wo_c,
                         w1, w2, ln_gamma, ln_beta, lp):
    B, T, D = h.shape
    P = vis.shape[1]
    Hff = w1.shape[1]
    kernel = functools.partial(_decoder_kernel, lp=lp,
                               scale=float(1.0 / (D ** 0.5)))
    # TODO(synk): at realistic D this monolithic layer should be K/N-tiled
    #             (FFN accumulator grid axis + single-buffered weights) to
    #             stay inside v7x's 64 MiB VMEM; at demo sizes it fits easily.
    return pl.pallas_call(
        kernel,
        out_shape=jax.ShapeDtypeStruct((B, T, D), F32),
        grid=(B,),
        in_specs=[
            pl.BlockSpec((1, T, D), lambda i: (i, 0, 0)),
            pl.BlockSpec((1, P, D), lambda i: (i, 0, 0)),
            pl.BlockSpec((1, T), lambda i: (i, 0)),
            pl.BlockSpec((D, 3 * D), lambda i: (0, 0)),
            pl.BlockSpec((D, D), lambda i: (0, 0)),
            pl.BlockSpec((D, 3 * D), lambda i: (0, 0)),
            pl.BlockSpec((D, D), lambda i: (0, 0)),
            pl.BlockSpec((D, Hff), lambda i: (0, 0)),
            pl.BlockSpec((Hff, D), lambda i: (0, 0)),
            pl.BlockSpec((3, D), lambda i: (0, 0)),
            pl.BlockSpec((3, D), lambda i: (0, 0)),
        ],
        out_specs=pl.BlockSpec((1, T, D), lambda i: (i, 0, 0)),
        compiler_params=pltpu.CompilerParams(dimension_semantics=("parallel",)),
    )(h, vis, pad_mask,
      wqkv_s.astype(BF16), wo_s.astype(BF16),
      wqkv_c.astype(BF16), wo_c.astype(BF16),
      w1.astype(BF16), w2.astype(BF16), ln_gamma, ln_beta)


# ---------------------------------------------------------------------------
# get_sim_matrix
# ---------------------------------------------------------------------------
def _sim_kernel(box_ref, mask_ref, rw_ref, rb_ref, cw_ref, cb_ref,
                row_o_ref, col_o_ref):
    x = box_ref[0].astype(BF16)                                   # (N, D)
    m = mask_ref[0]                                               # (1, N)
    mm = m.T * m                                                  # (N, N)

    def proj_norm(w, b):
        p = jnp.dot(x, w, preferred_element_type=F32) + b
        inv = lax.rsqrt(jnp.maximum(jnp.sum(p * p, axis=-1, keepdims=True),
                                    1e-24))                       # F.normalize
        return p * inv

    rp = proj_norm(rw_ref[...], rb_ref[...])
    cp = proj_norm(cw_ref[...], cb_ref[...])
    row_o_ref[0] = lax.dot_general(rp, rp, (((1,), (1,)), ((), ())),
                                   preferred_element_type=F32) * mm
    col_o_ref[0] = lax.dot_general(cp, cp, (((1,), (1,)), ((), ())),
                                   preferred_element_type=F32) * mm


def pallas_sim_matrix(box, mask, rw, rb, cw, cb):
    B, N, D = box.shape
    mask3 = mask.reshape(B, 1, N).astype(F32)
    return pl.pallas_call(
        _sim_kernel,
        out_shape=(jax.ShapeDtypeStruct((B, N, N), F32),
                   jax.ShapeDtypeStruct((B, N, N), F32)),
        grid=(B,),
        in_specs=[
            pl.BlockSpec((1, N, D), lambda i: (i, 0, 0)),
            pl.BlockSpec((1, 1, N), lambda i: (i, 0, 0)),
            pl.BlockSpec((D, D), lambda i: (0, 0)),
            pl.BlockSpec((1, D), lambda i: (0, 0)),
            pl.BlockSpec((D, D), lambda i: (0, 0)),
            pl.BlockSpec((1, D), lambda i: (0, 0)),
        ],
        out_specs=(pl.BlockSpec((1, N, N), lambda i: (i, 0, 0)),
                   pl.BlockSpec((1, N, N), lambda i: (i, 0, 0))),
        compiler_params=pltpu.CompilerParams(dimension_semantics=("parallel",)),
    )(box, mask3, rw.astype(BF16), rb.reshape(1, D),
      cw.astype(BF16), cb.reshape(1, D))


# ---------------------------------------------------------------------------
# LayoutPointer
# ---------------------------------------------------------------------------
def _pointer_kernel(box_ref, tag_ref, wb_ref, bb_ref, wt_ref, bt_ref,
                    empty_ref, ptr_o_ref, empty_o_ref, *, inv_temp):
    bp = jnp.dot(box_ref[0].astype(BF16), wb_ref[...],
                 preferred_element_type=F32) + bb_ref[...]
    tp = jnp.dot(tag_ref[0].astype(BF16), wt_ref[...],
                 preferred_element_type=F32) + bt_ref[...]
    ptr_o_ref[0] = lax.dot_general(bp, tp, (((1,), (1,)), ((), ())),
                                   preferred_element_type=F32) * inv_temp
    empty_o_ref[0] = lax.dot_general(empty_ref[...], tp,
                                     (((1,), (1,)), ((), ())),
                                     preferred_element_type=F32) * inv_temp


def pallas_layout_pointer(box, tag, wb, bb, wt, bt, empty_embed, temperature):
    B, N, D = box.shape
    T = tag.shape[1]
    kernel = functools.partial(_pointer_kernel, inv_temp=float(1.0 / temperature))
    return pl.pallas_call(
        kernel,
        out_shape=(jax.ShapeDtypeStruct((B, N, T), F32),
                   jax.ShapeDtypeStruct((B, 1, T), F32)),
        grid=(B,),
        in_specs=[
            pl.BlockSpec((1, N, D), lambda i: (i, 0, 0)),
            pl.BlockSpec((1, T, D), lambda i: (i, 0, 0)),
            pl.BlockSpec((D, D), lambda i: (0, 0)),
            pl.BlockSpec((1, D), lambda i: (0, 0)),
            pl.BlockSpec((D, D), lambda i: (0, 0)),
            pl.BlockSpec((1, D), lambda i: (0, 0)),
            pl.BlockSpec((1, D), lambda i: (0, 0)),
        ],
        out_specs=(pl.BlockSpec((1, N, T), lambda i: (i, 0, 0)),
                   pl.BlockSpec((1, 1, T), lambda i: (i, 0, 0))),
        compiler_params=pltpu.CompilerParams(dimension_semantics=("parallel",)),
    )(box, tag, wb.astype(BF16), bb.reshape(1, D),
      wt.astype(BF16), bt.reshape(1, D), empty_embed.reshape(1, D))


# ---------------------------------------------------------------------------
# Forward pass glue
# ---------------------------------------------------------------------------
def tflop_forward(params, batch, cfg):
    images = batch["images"]                  # (B, 3, 16, 16)  NCHW
    bboxes = batch["bboxes"]                  # (B, N, 4)
    labels = batch["token_ids"]               # (B, seq)
    attention_mask = batch["attention_mask"].astype(F32)   # (B, total)
    data_tag_mask = batch["data_tag_mask"]
    B = images.shape[0]
    lp = cfg["layout_prompt_length"]

    # --- image encoder stand-in: patchify + fused patch-embed / visual-proj ---
    # TODO(synk): full Swinv2Model backbone not reimplemented; a patch-embedding
    #             stand-in produces the (B, P, hidden) visual feature map.
    p = 4
    _, C, Hh, Ww = images.shape
    patches = images.reshape(B, C, Hh // p, p, Ww // p, p)
    patches = patches.transpose(0, 2, 4, 1, 3, 5).reshape(
        B, (Hh // p) * (Ww // p), C * p * p)
    visual_features = pallas_visual_encoder(
        patches, params["patch_embed_w"], params["patch_embed_b"],
        params["visual_proj_w"], params["visual_proj_b"])

    # --- layout encoder stand-in + prepare_layout_prompt (fused kernel) ---
    # TODO(synk): the real ROI-aware LayoutEncoder is external to this module.
    bbox_pad = jnp.pad(bboxes, ((0, 0), (0, 0), (0, 4)))
    vis_mean = jnp.mean(visual_features, axis=1, keepdims=True)
    layout_prompt = pallas_layout_prompt(
        bbox_pad, vis_mean,
        params["bbox_proj_w"], params["bbox_proj_b"],
        params["layout_pos_embed"][:lp],
        params["prompt_ln_gamma"], params["prompt_ln_beta"])

    # --- token embeddings ---
    token_embeddings = params["token_embed"][labels]           # (B, seq, D)

    # Layout prompt occupies the FIRST lp positions, consistent with the
    # causal-mask construction and the box/tag slicing below (the reference
    # TFLOPDecoder performs this reordering internally).
    decoder_inputs = jnp.concatenate([layout_prompt, token_embeddings], axis=1)

    # --- logical structure decoder (single-layer BART-style stand-in) ---
    # TODO(synk): multi-layer BartModel/TFLOPDecoder not reimplemented.
    last_hidden_state = pallas_decoder_layer(
        decoder_inputs, visual_features, attention_mask,
        params["dec_wqkv_self"], params["dec_wo_self"],
        params["dec_wqkv_cross"], params["dec_wo_cross"],
        params["dec_ff_w1"], params["dec_ff_w2"],
        params["dec_ln_gamma"], params["dec_ln_beta"], lp)

    box_features = last_hidden_state[:, :lp, :]
    tag_features = last_hidden_state[:, lp:, :]

    tag_logits = pallas_linear(tag_features, params["output_proj_w"])  # no bias

    pointer_logits, empty_pointer_logits = pallas_layout_pointer(
        box_features, tag_features,
        params["ptr_box_w"], params["ptr_box_b"],
        params["ptr_tag_w"], params["ptr_tag_b"],
        params["ptr_empty_embed"], cfg["temperature"])

    row_sim_matrix, col_sim_matrix = pallas_sim_matrix(
        box_features, attention_mask[:, :lp],
        params["row_span_w"], params["row_span_b"],
        params["col_span_w"], params["col_span_b"])

    # TODO(synk): get_coef_matrix needs the OTSL tokenizer span decoding; the
    #             span coefficient targets are returned as zero placeholders.
    row_span_coef = jnp.zeros((B, lp, lp), F32)
    col_span_coef = jnp.zeros((B, lp, lp), F32)
    # TODO(synk): visualize_tag_logits writes heatmap stats to disk; skipped.

    return {
        "tag_logits": tag_logits,
        "pointer_logits": pointer_logits,
        "empty_pointer_logits": empty_pointer_logits,
        "data_tag_mask": data_tag_mask,
        "row_sim_matrix": row_sim_matrix,
        "col_sim_matrix": col_sim_matrix,
        "row_span_coef": row_span_coef,
        "col_span_coef": col_span_coef,
    }


def init_params(key, cfg):
    D = cfg["feature_dim"]
    V = cfg["vocab_size"]
    ks = jax.random.split(key, 18)

    def dense(k, i, o):
        return (jax.random.normal(k, (i, o), F32) * 0.02).astype(F32)

    return dict(
        patch_embed_w=dense(ks[0], 48, 48),
        patch_embed_b=jnp.zeros((48,), F32),
        visual_proj_w=dense(ks[1], 48, D),
        visual_proj_b=jnp.zeros((D,), F32),
        bbox_proj_w=dense(ks[2], 8, D),
        bbox_proj_b=jnp.zeros((D,), F32),
        layout_pos_embed=dense(ks[3], cfg["total_sequence_length"], D),
        prompt_ln_gamma=jnp.ones((D,), F32),
        prompt_ln_beta=jnp.zeros((D,), F32),
        token_embed=dense(ks[4], V, D),
        dec_wqkv_self=dense(ks[5], D, 3 * D),
        dec_wo_self=dense(ks[6], D, D),
        dec_wqkv_cross=dense(ks[7], D, 3 * D),
        dec_wo_cross=dense(ks[8], D, D),
        dec_ff_w1=dense(ks[9], D, 4 * D),
        dec_ff_w2=dense(ks[10], 4 * D, D),
        dec_ln_gamma=jnp.ones((3, D), F32),
        dec_ln_beta=jnp.zeros((3, D), F32),
        output_proj_w=dense(ks[11], D, V),
        ptr_box_w=dense(ks[12], D, D),
        ptr_box_b=jnp.zeros((D,), F32),
        ptr_tag_w=dense(ks[13], D, D),
        ptr_tag_b=jnp.zeros((D,), F32),
        ptr_empty_embed=dense(ks[14], 1, D),
        row_span_w=dense(ks[15], D, D),
        row_span_b=jnp.zeros((D,), F32),
        col_span_w=dense(ks[16], D, D),
        col_span_b=jnp.zeros((D,), F32),
    )


if __name__ == "__main__":
    cfg = dict(
        feature_dim=128,          # lane-dense hidden size
        total_sequence_length=16,
        layout_prompt_length=8,   # = otsl_sequence_length = total // 2
        vocab_size=8,             # PAD UNK BOS EOS C L U NL
        temperature=0.1,
    )
    B, N, seq, total = 2, 8, 8, 16

    key = jax.random.PRNGKey(0)
    k_img, k_box, k_tok, k_par = jax.random.split(key, 4)

    images = jax.random.normal(k_img, (B, 3, 16, 16), F32)
    bboxes = jax.random.uniform(k_box, (B, N, 4), F32)
    token_ids = jax.random.randint(k_tok, (B, seq), 0, cfg["vocab_size"])
    attention_mask = jnp.ones((B, total), F32)
    attention_mask = attention_mask.at[:, 6:8].set(0.0)   # some padded boxes
    attention_mask = attention_mask.at[:, 14:].set(0.0)   # some padded tokens
    data_tag_mask = jnp.zeros((B, total), jnp.bool_)
    box_indices = jnp.zeros((B, N), jnp.int32)            # unused by forward

    batch = dict(images=images, bboxes=bboxes, token_ids=token_ids,
                 attention_mask=attention_mask, data_tag_mask=data_tag_mask,
                 box_indices=box_indices)

    params = init_params(k_par, cfg)
    outputs = tflop_forward(params, batch, cfg)
    jax.block_until_ready(outputs)

    assert outputs["tag_logits"].shape == (B, seq, cfg["vocab_size"])
    assert outputs["pointer_logits"].shape == (B, N, seq)
    assert outputs["empty_pointer_logits"].shape == (B, 1, seq)
    assert outputs["row_sim_matrix"].shape == (B, N, N)
    assert outputs["col_sim_matrix"].shape == (B, N, N)
    print("KERNEL_OK")
</pallas_src>

<mosaic_0001>
module attributes {stable_mosaic.version = 11 : i64} {
  func.func @_visual_encoder_kernel(%arg0: i32, %arg1: memref<32x48xbf16, #tpu.memory_space<vmem>>, %arg2: memref<48x48xbf16, #tpu.memory_space<vmem>>, %arg3: memref<1x48xf32, #tpu.memory_space<vmem>>, %arg4: memref<48x128xbf16, #tpu.memory_space<vmem>>, %arg5: memref<1x128xf32, #tpu.memory_space<vmem>>, %arg6: memref<32x128xf32, #tpu.memory_space<vmem>>) attributes {dimension_semantics = [#tpu.dimension_semantics<parallel>], iteration_bounds = array<i64: 1>, scalar_prefetch = 0 : i64, scratch_operands = 0 : i64, tpu.core_type = #tpu.core_type<tc>, window_params = [{transform_indices = @transform_0, window_bounds = array<i64: 32, 48>}, {pipeline_mode = #tpu.pipeline_mode<synchronous>, transform_indices = @transform_1, window_bounds = array<i64: 48, 48>}, {pipeline_mode = #tpu.pipeline_mode<synchronous>, transform_indices = @transform_2, window_bounds = array<i64: 1, 48>}, {pipeline_mode = #tpu.pipeline_mode<synchronous>, transform_indices = @transform_3, window_bounds = array<i64: 48, 128>}, {pipeline_mode = #tpu.pipeline_mode<synchronous>, transform_indices = @transform_4, window_bounds = array<i64: 1, 128>}, {transform_indices = @transform_5, window_bounds = array<i64: 32, 128>}]} {
    %c0 = arith.constant 0 : index
    %c0_0 = arith.constant 0 : index
    %0 = vector.load %arg1[%c0, %c0_0] : memref<32x48xbf16, #tpu.memory_space<vmem>>, vector<32x48xbf16>
    %c0_1 = arith.constant 0 : index
    %c0_2 = arith.constant 0 : index
    %1 = vector.load %arg2[%c0_1, %c0_2] : memref<48x48xbf16, #tpu.memory_space<vmem>>, vector<48x48xbf16>
    %cst = arith.constant dense<0.000000e+00> : vector<32x48xf32>
    %2 = tpu.matmul %0, %1, %cst {dimension_numbers = #tpu.dot_dimension_numbers<[1], [0], [0], [1], [0, 0, 1, 1], [], []>} : vector<32x48xbf16>, vector<48x48xbf16>, vector<32x48xf32> -> vector<32x48xf32>
    %c0_3 = arith.constant 0 : index
    %c0_4 = arith.constant 0 : index
    %3 = vector.load %arg3[%c0_3, %c0_4] : memref<1x48xf32, #tpu.memory_space<vmem>>, vector<1x48xf32>
    %4 = vector.broadcast %3 : vector<1x48xf32> to vector<32x48xf32>
    %5 = arith.addf %2, %4 : vector<32x48xf32>
    %6 = arith.truncf %5 : vector<32x48xf32> to vector<32x48xbf16>
    %c0_5 = arith.constant 0 : index
    %c0_6 = arith.constant 0 : index
    %7 = vector.load %arg4[%c0_5, %c0_6] : memref<48x128xbf16, #tpu.memory_space<vmem>>, vector<48x128xbf16>
    %cst_7 = arith.constant dense<0.000000e+00> : vector<32x128xf32>
    %8 = tpu.matmul %6, %7, %cst_7 {dimension_numbers = #tpu.dot_dimension_numbers<[1], [0], [0], [1], [0, 0, 1, 1], [], []>} : vector<32x48xbf16>, vector<48x128xbf16>, vector<32x128xf32> -> vector<32x128xf32>
    %c0_8 = arith.constant 0 : index
    %c0_9 = arith.constant 0 : index
    %9 = vector.load %arg5[%c0_8, %c0_9] : memref<1x128xf32, #tpu.memory_space<vmem>>, vector<1x128xf32>
    %10 = vector.broadcast %9 : vector<1x128xf32> to vector<32x128xf32>
    %11 = arith.addf %8, %10 : vector<32x128xf32>
    %c0_10 = arith.constant 0 : index
    %c0_11 = arith.constant 0 : index
    %12 = vector.load %arg6[%c0_10, %c0_11] : memref<32x128xf32, #tpu.memory_space<vmem>>, vector<32x128xf32>
    tpu.vector_store %arg6[%c0_10, %c0_11], %11 {strides = array<i32>} : memref<32x128xf32, #tpu.memory_space<vmem>>, vector<32x128xf32>,
    return
  }
  func.func @transform_0(%arg0: i32) -> (i32, i32) {
    %c0_i32 = arith.constant 0 : i32
    %c0_i32_0 = arith.constant 0 : i32
    return %arg0, %c0_i32 : i32, i32
  }
  func.func @transform_1(%arg0: i32) -> (i32, i32) {
    %c0_i32 = arith.constant 0 : i32
    %c0_i32_0 = arith.constant 0 : i32
    %c0_i32_1 = arith.constant 0 : i32
    return %c0_i32, %c0_i32_0 : i32, i32
  }
  func.func @transform_2(%arg0: i32) -> (i32, i32) {
    %c0_i32 = arith.constant 0 : i32
    %c0_i32_0 = arith.constant 0 : i32
    %c0_i32_1 = arith.constant 0 : i32
    return %c0_i32, %c0_i32_0 : i32, i32
  }
  func.func @transform_3(%arg0: i32) -> (i32, i32) {
    %c0_i32 = arith.constant 0 : i32
    %c0_i32_0 = arith.constant 0 : i32
    %c0_i32_1 = arith.constant 0 : i32
    return %c0_i32, %c0_i32_0 : i32, i32
  }
  func.func @transform_4(%arg0: i32) -> (i32, i32) {
    %c0_i32 = arith.constant 0 : i32
    %c0_i32_0 = arith.constant 0 : i32
    %c0_i32_1 = arith.constant 0 : i32
    return %c0_i32, %c0_i32_0 : i32, i32
  }
  func.func @transform_5(%arg0: i32) -> (i32, i32) {
    %c0_i32 = arith.constant 0 : i32
    %c0_i32_0 = arith.constant 0 : i32
    return %arg0, %c0_i32 : i32, i32
  }
}

</mosaic_0001>

<bundles_post_ra>
// kernel: tpu_custom_call.1
= control target key start
LH: loop header
LB: loop body
LE: loop exit
PB: predicated region body
PF: predicated region fallthrough
CT: control target
= control target key end

     0   :  { %10 = vsyncpa [#allocation3], 0  ;;  %s540_s0 = inlined_call_operand.hbm [shape: bf16[32,48], index: 0, kind: input, shape index: {}]   ;;  %s541_s1 = inlined_call_operand.hbm [shape: bf16[48,48], index: 1, kind: input, shape index: {}]   ;;  %s542_s2 = inlined_call_operand.vmem [shape: f32[1,48], index: 2, kind: input, shape index: {}]   ;;  %s543_s3 = inlined_call_operand.hbm [shape: bf16[48,128], index: 3, kind: input, shape index: {}]   ;;  %s544_s4 = inlined_call_operand.vmem [shape: f32[1,128], index: 4, kind: input, shape index: {}]   ;;  %s545_s5 = inlined_call_operand.hbm [shape: f32[32,128], index: 5, kind: output, shape index: {}]  }
   0x1   :  { %11 = vsyncpa [#allocation6], 0 }
   0x2   :  { %12 = vsyncpa [#allocation4], 0  ;;  %s428_s18 = smov [#allocation5]   ;;  %s429_s20 = smov [#allocation2]  }
   0x3   :  { %s30_s19 = sshll.u32 %s428_s18, 4  ;;  %s18_s21 = sshll.u32 %s429_s20, 4  ;;  %s31_s19 = int_to_ptr.vmem [resolvable:$true] %s30_s19  ;;  %s466_s21 = int_to_ptr.vmem [resolvable:$true] %s18_s21 }
   0x4   :  { %s334_s24 = scalar_lea.hbm %s541_s1, 384 }
   0x5   :  { %p335_p0 = scmp.ne.s32.totalorder %s541_s1, %s334_s24  ;;  %p338_p1 = scmp.lt.u32.totalorder %s334_s24, %s541_s1 }
   0x7   :  { %p340_p2 = pnand %p338_p1, %p335_p0 }
   0x9   :  { %343 = shalt.err (!%p340_p2)
}
   0xa   :  { %s344_s29 = scalar_lea.vmem %s31_s19, 384  ;;  %p349_p4 = scmp.lt.s32.totalorder %s31_s19, %s31_s19 }
   0xb   :  { %p345_p3 = scmp.ne.s32.totalorder %s31_s19, %s344_s29  ;;  %p350_p5 = scmp.lt.s32.totalorder %s344_s29, %s344_s29 }
   0xd   :  { %p351_p6 = por %p350_p5, %p349_p4 }
   0xf   :  { %p352_p7 = pnand %p351_p6, %p345_p3 }
  0x11   :  { %355 = shalt.err (!%p352_p7)
}
  0x12   :  { %s430_s30 = smov 64   ;;  %s431_s6 = smov 4  }
  0x13   :  { %36 = dma.hbm_to_vmem [thread:$0]  %s541_s1, 384, %s31_s19, [#allocation6], %s430_s30, %s430_s30, %s431_s6  }
  0x14   :  { %s356_s11 = scalar_lea.hbm %s540_s0, 256 }
  0x15   :  { %p357_p8 = scmp.ne.s32.totalorder %s540_s0, %s356_s11  ;;  %p360_p9 = scmp.lt.u32.totalorder %s356_s11, %s540_s0 }
  0x17   :  { %p362_p10 = pnand %p360_p9, %p357_p8 }
  0x19   :  { %365 = shalt.err (!%p362_p10)
}
  0x1a   :  { %s366_s16 = scalar_lea.vmem %s466_s21, 256  ;;  %p371_p12 = scmp.lt.s32.totalorder %s466_s21, %s466_s21 }
  0x1b   :  { %p367_p11 = scmp.ne.s32.totalorder %s466_s21, %s366_s16  ;;  %p372_p13 = scmp.lt.s32.totalorder %s366_s16, %s366_s16 }
  0x1d   :  { %p373_p0 = por %p372_p13, %p371_p12 }
  0x1f   :  { %p374_p1 = pnand %p373_p0, %p367_p11 }
  0x21   :  { %377 = shalt.err (!%p374_p1)
}
  0x22   :  { %24 = dma.hbm_to_vmem [thread:$0]  %s540_s0, 256, %s466_s21, [#allocation3], %s430_s30, %s430_s30, %s431_s6  }
  0x23   :  { %s432_s18 = smov [#allocation7]   ;;  %s378_s23 = scalar_lea.hbm %s543_s3, 384 }
  0x24   :  { %s44_s19 = sshll.u32 %s432_s18, 4  ;;  %p379_p2 = scmp.ne.s32.totalorder %s543_s3, %s378_s23  ;;  %s45_s19 = int_to_ptr.vmem [resolvable:$true] %s44_s19 }
  0x25   :  { %p382_p3 = scmp.lt.u32.totalorder %s378_s23, %s543_s3 }
  0x27   :  { %p384_p4 = pnand %p382_p3, %p379_p2 }
  0x29   :  { %387 = shalt.err (!%p384_p4)
}
  0x2a   :  { %s388_s28 = scalar_lea.vmem %s45_s19, 384  ;;  %p393_p6 = scmp.lt.s32.totalorder %s45_s19, %s45_s19 }
  0x2b   :  { %p389_p5 = scmp.ne.s32.totalorder %s45_s19, %s388_s28  ;;  %p394_p7 = scmp.lt.s32.totalorder %s388_s28, %s388_s28 }
  0x2d   :  { %p395_p8 = por %p394_p7, %p393_p6 }
  0x2f   :  { %p396_p9 = pnand %p395_p8, %p389_p5 }
  0x31   :  { %399 = shalt.err (!%p396_p9)
}
  0x32   :  { %50 = dma.hbm_to_vmem [thread:$0]  %s543_s3, 384, %s45_s19, [#allocation6], %s430_s30, %s430_s30, %s431_s6  }
  0x33   :  { %422 = dma.done.wait [#allocation3], 256  }
  0x34   :  { %423 = vsyncadd [#allocation3], 4294967040 }
  0x35   :  { %424 = dma.done.wait [#allocation6], 768  }
  0x36   :  { %425 = vsyncadd [#allocation6], 4294966528  ;;  %v326_v0 = vld [vmem:[#allocation5] sm:$0xff]   ;;  %v327_v1 = vld [vmem:[#allocation5 + $0x8] sm:$0xff]   ;;  %vm108_vm0 = vcmask 392192   ;;  %s433_s7 = smov [#allocation8]  }
  0x37   :  { %298 = vmatprep.subr.bf16.mxu0 %v326_v0  ;;  %v329_v2 = vld [vmem:[#allocation2] sm:$0xff]   ;;  %v331_v4 = vld [vmem:[#allocation7] sm:$0xff]   ;;  %v332_v6 = vld [vmem:[#allocation7 + $0x8] sm:$0xff]  }
  0x38   :  { %299 = vmatpush3.bf16.msra.mxu0 %v326_v0  ;;  %v328_v3 = vld [vmem:[#allocation5 + $0x10] sm:$0xff]   ;;  %304 = vmatprep.mubr.msk.bf16.mxu0 %vm108_vm0, %v329_v2  ;;  %v330_v5 = vld [vmem:[#allocation2 + $0x8] sm:$0xff]   ;;  %v333_v7 = vld [vmem:[#allocation7 + $0x10] sm:$0xff]  }
  0x39   :  { %300 = vmatprep.subr.bf16.mxu0 %v327_v1  ;;  %308 = vmatprep.subr.bf16.mxu1 %v331_v4  ;;  %v274_v9 = vld [vmem:[%s542_s2] ss:$0 sm:$0xff]  ;;  %s261_s2 = sshll.u32 %s433_s7, 4  ;;  %s262_s2 = int_to_ptr.vmem [resolvable:$true] %s261_s2 }
  0x3a   :  { %309 = vmatpush3.bf16.msra.mxu1 %v331_v4  ;;  %v282_v19 = vld [vmem:[%s544_s4] ss:$0 sm:$0xff]  ;;  %s400_s8 = scalar_lea.vmem %s262_s2, 512  ;;  %p405_p11 = scmp.lt.s32.totalorder %s262_s2, %s262_s2 }
  0x3b   :  { %310 = vmatprep.subr.bf16.mxu1 %v332_v6  ;;  %p401_p10 = scmp.ne.s32.totalorder %s262_s2, %s400_s8  ;;  %p406_p12 = scmp.lt.s32.totalorder %s400_s8, %s400_s8 }
  0x3c   :  { %301 = vmatpush3.bf16.msra.mxu0 %v327_v1 }
  0x3d   :  { %302 = vmatprep.subr.bf16.mxu0 %v328_v3  ;;  %p407_p13 = por %p406_p12, %p405_p11 }
  0x3e   :  { %311 = vmatpush3.bf16.msra.mxu1 %v332_v6 }
  0x3f   :  { %312 = vmatprep.subr.bf16.mxu1 %v333_v7  ;;  %p408_p0 = pnand %p407_p13, %p401_p10 }
  0x40   :  { %303 = vmatpush3.bf16.msra.mxu0 %v328_v3 }
  0x42   :  { %313 = vmatpush3.bf16.msra.mxu1 %v333_v7 }
  0x43   :  { %305 = vmatmul.mubr.msk.bf16.vlgmr.msra.gmra.mrb[0].mxu0 %vm108_vm0, %v330_v5 }
 0x116   :  { %v306_v8 = vpop.f32.mrb[0].mxu0 }
 0x117   :  { %v149_v10 = vpop.f32.mrb[1].mxu0  ;;  %v158_v12 = vadd.f32 %v306_v8, %v274_v9 }
 0x118   :  { %v307_v11 = vpop.f32.mrb[2].mxu0  ;;  %v150_v15 = vadd.f32 %v274_v9, %v149_v10 }
 0x119   :  { %v161_v13 = vadd.f32 %v307_v11, %v274_v9  ;;  %v152_v14 = vpop.f32.mrb[3].mxu0 }
 0x11a   :  { %v153_v16 = vadd.f32 %v274_v9, %v152_v14 }
 0x11b   :  { %v165_v17 = vpack.c.bf16 %v161_v13, %v158_v12 }
 0x11c   :  { %v164_v18 = vpack.c.bf16 %v153_v16, %v150_v15 }
 0x11e   :  { %314 = vmatprep.mubr.msk.bf16.mxu1 %vm108_vm0, %v164_v18 }
 0x11f   :  { %315 = vmatmul.mubr.msk.bf16.vlgmr.msra.gmra.mrb[0].mxu1 %vm108_vm0, %v165_v17 }
 0x1f2   :  { %v316_v20 = vpop.f32.mrb[0].mxu1 }
 0x1f3   :  { %v246_v21 = vadd.f32 %v316_v20, %v282_v19  ;;  %v237_v22 = vpop.f32.mrb[1].mxu1 }
 0x1f4   :  { %v238_v23 = vadd.f32 %v282_v19, %v237_v22  ;;  %v317_v24 = vpop.f32.mrb[2].mxu1 }
 0x1f5   :  { %254 = vst [vmem:[#allocation8 + $0x10] sm:$0xff] %v246_v21  ;;  %v249_v25 = vadd.f32 %v317_v24, %v282_v19  ;;  %v240_v26 = vpop.f32.mrb[3].mxu1 }
 0x1f6   :  { %252 = vst [vmem:[#allocation8] sm:$0xff] %v238_v23  ;;  %v241_v27 = vadd.f32 %v282_v19, %v240_v26 }
 0x1f7   :  { %255 = vst [vmem:[#allocation8 + $0x18] sm:$0xff] %v249_v25 }
 0x1f8   :  { %253 = vst [vmem:[#allocation8 + $0x8] sm:$0xff] %v241_v27 }
 0x1f9   :  { %411 = shalt.err (!%p408_p0)
}
 0x1fa   :  { %s412_s10 = scalar_lea.hbm %s545_s5, 512 }
 0x1fb   :  { %p413_p1 = scmp.ne.s32.totalorder %s545_s5, %s412_s10  ;;  %p416_p2 = scmp.lt.u32.totalorder %s412_s10, %s545_s5 }
 0x1fd   :  { %p418_p3 = pnand %p416_p2, %p413_p1 }
 0x1ff   :  { %421 = shalt.err (!%p418_p3)
}
 0x200   :  { %s434_s15 = smov 128   ;;  %s435_s16 = smov 8  }
 0x201   :  { %267 = dma.vmem_to_hbm [thread:$0]  %s262_s2, 512, %s545_s5, [#allocation4], %s434_s15, %s434_s15, %s435_s16  }
 0x202   :  { %426 = dma.done.wait [#allocation4], 512  }
 0x203   :  { %427 = vsyncadd [#allocation4], 4294966784 }
 0x204   :  { %271 = vsyncpa [#allocation3], 1 }
 0x205   :  { %272 = vsyncpa [#allocation6], 1 }
 0x206   :  { %273 = vsyncpa [#allocation4], 1 }

</bundles_post_ra>
